<compile_context>
chip_gen: v7x
topology: tpu7x:2x2x1
jax: 0.10.0
libtpu: 0.0.40
codegen_flags: <defaults>
</compile_context>

<pallas_src>
import functools

import jax
import jax.numpy as jnp
from jax.experimental import pallas as pl
from jax.experimental.pallas import tpu as pltpu


def _yolo_kernel(p_ref, a_ref, g_ref, io_ref, *, stride, nc):
    """One grid step: decode g_blk (batch, anchor) slices, each of shape (C, S)."""
    x = p_ref[...].astype(jnp.float32)                # (g_blk, C, S), cast per-tile

    # One batched sigmoid over the full block (full sublane/EUP utilization); the two
    # wh rows are overwritten by the exp path below (cheaper than slicing beforehand).
    sig = jax.nn.sigmoid(x)

    # (2, S) grid rows [gx, gy] broadcast over the g_blk slices.
    xy = (sig[:, 0:2, :] + g_ref[...]) * stride                       # (g_blk, 2, S)
    # Raw anchors (stride already folded in), (g_blk, 2, 1) lane-broadcast.
    wh = jnp.exp(x[:, 2:4, :]) * a_ref[...]                           # (g_blk, 2, S)

    # Channel-range stores straight to the lane-dense output block: every store is a
    # full-128-lane row (only sublane-partial), no scratch round-trip, no transpose.
    io_ref[:, 0:2, :] = xy
    io_ref[:, 2:4, :] = wh
    if nc == 1:
        io_ref[:, 4:5, :] = sig[:, 4:5, :]
        io_ref[:, 5:6, :] = jnp.ones_like(sig[:, 5:6, :])             # class prob -> 1
    else:
        io_ref[:, 4:, :] = sig[:, 4:, :]


def _chip_info():
    """Per-chip VMEM budget for block sizing, scoped-VMEM cap, TensorCore count."""
    try:
        kind = jax.devices()[0].device_kind.lower()
    except Exception:
        kind = ""
    if ("v5 lite" in kind) or ("v5e" in kind) or ("v5lite" in kind):
        # 128 MiB physical, 16 MiB default scoped limit, 1 TC.
        return {"budget": 12 << 20, "vmem_cap": 96 << 20, "cores": 1}
    if ("v7" in kind) or ("7x" in kind) or ("tpu7" in kind):
        # Only 64 MiB physical VMEM; 2 TensorCores per chip.
        return {"budget": 20 << 20, "vmem_cap": 48 << 20, "cores": 2}
    # v6e-like default: 128 MiB physical, 32 MiB default scoped limit, 1 TC.
    return {"budget": 24 << 20, "vmem_cap": 96 << 20, "cores": 1}


def _choose_g_blk(g_total, c, s, in_itemsize, budget_bytes, n_cores):
    """How many (batch, anchor) slices each grid step processes."""
    per_slice = 2 * c * s * (in_itemsize + 4)          # double-buffered input + f32 output
    cap = max(1, int(budget_bytes // per_slice))
    divisors = [d for d in range(1, g_total + 1) if g_total % d == 0]
    if n_cores >= 2:
        # Two TensorCores: keep >=4 steps and an even count so each core pipelines.
        min_steps, want_even = 4, True
    else:
        # Single TensorCore: biggest block that still leaves >=2 steps for DMA overlap.
        min_steps, want_even = (2 if g_total >= 2 else 1), False
    best = None
    for d in divisors:
        if d > cap:
            continue
        steps = g_total // d
        if steps < min_steps:
            continue
        if want_even and steps % 2 != 0:
            continue
        if best is None or d > best:
            best = d
    if best is None:
        best = max(d for d in divisors if d <= cap)
    return best


def yolo_forward_pallas(p_nchw, anchors, nc, img_size):
    bs, ch, ny, nx = p_nchw.shape
    na = anchors.shape[0]
    C = nc + 5
    assert ch == na * C, "channel dim must equal n_anchors * (nc + 5)"
    stride = float(img_size) / max(nx, ny)
    S = ny * nx
    G = bs * na

    # Native-dtype contiguous view (free reshape); the f32 cast happens per-tile in
    # the kernel, so no extra pre-kernel HBM pass for bf16/fp16 heads.
    p_flat = p_nchw.reshape(G, C, S)

    # Raw anchors per (batch, anchor) slice, (G, 2, 1): b-major, a-minor (matches p_flat).
    awh = jnp.tile(anchors.astype(jnp.float32), (bs, 1)).reshape(G, 2, 1)

    # Exact integer grid coordinates as a tiny (2, S) f32 input: rows = (gx, gy).
    ys, xs = jnp.meshgrid(jnp.arange(ny), jnp.arange(nx), indexing="ij")
    grid_f = jnp.stack([xs.reshape(-1), ys.reshape(-1)], axis=0).astype(jnp.float32)

    info = _chip_info()
    g_blk = _choose_g_blk(G, C, S, p_flat.dtype.itemsize, info["budget"], info["cores"])
    n_steps = G // g_blk

    # Scoped-VMEM ceiling from the real footprint (double-buffered in + out blocks),
    # with headroom for the small constant inputs, capped per chip.
    blk_bytes = g_blk * C * S * (p_flat.dtype.itemsize + 4)
    vmem_limit = int(min(max(2 * blk_bytes + (4 << 20), 32 << 20), info["vmem_cap"]))

    kernel = functools.partial(_yolo_kernel, stride=stride, nc=nc)

    io_gcs = pl.pallas_call(
        kernel,
        out_shape=jax.ShapeDtypeStruct((G, C, S), jnp.float32),
        grid=(n_steps,),
        in_specs=[
            pl.BlockSpec((g_blk, C, S), lambda i: (i, 0, 0)),   # predictions block
            pl.BlockSpec((g_blk, 2, 1), lambda i: (i, 0, 0)),   # raw anchors per slice
            pl.BlockSpec((2, S), lambda i: (0, 0)),             # grid coords (resident)
        ],
        out_specs=pl.BlockSpec((g_blk, C, S), lambda i: (i, 0, 0)),  # lane-dense io
        compiler_params=pltpu.CompilerParams(
            dimension_semantics=("parallel",),
            vmem_limit_bytes=vmem_limit,
        ),
        cost_estimate=pl.CostEstimate(
            flops=6 * G * C * S,
            transcendentals=G * (C + 2) * S,
            bytes_accessed=G * C * S * (p_flat.dtype.itemsize + 4),
        ),
    )(p_flat, awh, grid_f)

    # Single fused XLA transpose to the (.., S, C)-major layout the module returns.
    io = (io_gcs.reshape(bs, na, C, ny, nx)
                .transpose(0, 1, 3, 4, 2)
                .reshape(bs, na * ny * nx, C))
    # Permuted raw predictions: pure data movement of the input — done by XLA, not the
    # kernel (materialised only if/when the caller actually consumes it).
    p_perm = p_nchw.reshape(bs, na, C, ny, nx).transpose(0, 1, 3, 4, 2)
    return io, p_perm


def yolo_reference(p_nchw, anchors, nc, img_size):
    """Pure-JAX mirror of the PyTorch eval path, for verification."""
    bs, ch, ny, nx = p_nchw.shape
    na = anchors.shape[0]
    C = nc + 5
    stride = float(img_size) / max(nx, ny)

    p = p_nchw.reshape(bs, na, C, ny, nx).transpose(0, 1, 3, 4, 2).astype(jnp.float32)
    ys, xs = jnp.meshgrid(jnp.arange(ny), jnp.arange(nx), indexing="ij")
    grid_xy = jnp.stack([xs, ys], axis=2).astype(jnp.float32).reshape(1, 1, ny, nx, 2)
    anchor_wh = (anchors.astype(jnp.float32) / stride).reshape(1, na, 1, 1, 2)

    xy = (jax.nn.sigmoid(p[..., 0:2]) + grid_xy) * stride
    wh = (jnp.exp(p[..., 2:4]) * anchor_wh) * stride
    rest = jax.nn.sigmoid(p[..., 4:])
    io = jnp.concatenate([xy, wh, rest], axis=-1)
    if nc == 1:
        io = io.at[..., 5].set(1.0)
    return io.reshape(bs, -1, C), p


if __name__ == "__main__":
    key = jax.random.PRNGKey(0)
    bs, nc = 2, 3
    anchors = jnp.array([[10.0, 13.0], [16.0, 30.0], [33.0, 23.0]], dtype=jnp.float32)
    na = anchors.shape[0]
    ny = nx = 16
    img_size = 256
    C = nc + 5

    # Deterministic synthetic "conv head output", NCHW.
    p = jax.random.normal(key, (bs, na * C, ny, nx), dtype=jnp.float32) * 0.5

    io, p_perm = yolo_forward_pallas(p, anchors, nc, img_size)
    io = jax.block_until_ready(io)
    p_perm = jax.block_until_ready(p_perm)

    io_ref, p_ref_out = yolo_reference(p, anchors, nc, img_size)

    assert io.shape == (bs, na * ny * nx, C), io.shape
    assert p_perm.shape == (bs, na, ny, nx, C), p_perm.shape
    assert jnp.allclose(io, io_ref, rtol=1e-5, atol=1e-5)
    assert jnp.allclose(p_perm, p_ref_out, rtol=1e-5, atol=1e-5)

    print("KERNEL_OK")
</pallas_src>

<mosaic_0001>
module attributes {stable_mosaic.version = 11 : i64} {
  func.func @_yolo_kernel(%arg0: i32, %arg1: memref<3x8x256xf32, #tpu.memory_space<vmem>>, %arg2: memref<3x2x1xf32, #tpu.memory_space<vmem>>, %arg3: memref<2x256xf32, #tpu.memory_space<vmem>>, %arg4: memref<3x8x256xf32, #tpu.memory_space<vmem>>) attributes {dimension_semantics = [#tpu.dimension_semantics<parallel>], iteration_bounds = array<i64: 2>, scalar_prefetch = 0 : i64, scratch_operands = 0 : i64, tpu.core_type = #tpu.core_type<tc>, window_params = [{transform_indices = @transform_0, window_bounds = array<i64: 3, 8, 256>}, {transform_indices = @transform_1, window_bounds = array<i64: 3, 2, 1>}, {pipeline_mode = #tpu.pipeline_mode<synchronous>, transform_indices = @transform_2, window_bounds = array<i64: 2, 256>}, {transform_indices = @transform_3, window_bounds = array<i64: 3, 8, 256>}]} {
    %c0 = arith.constant 0 : index
    %c0_0 = arith.constant 0 : index
    %c0_1 = arith.constant 0 : index
    %0 = vector.load %arg1[%c0, %c0_0, %c0_1] : memref<3x8x256xf32, #tpu.memory_space<vmem>>, vector<3x8x256xf32>
    %1 = arith.negf %0 : vector<3x8x256xf32>
    %2 = math.exp %1 : vector<3x8x256xf32>
    %cst = arith.constant 1.000000e+00 : f32
    %3 = vector.broadcast %cst : f32 to vector<3x8x256xf32>
    %4 = arith.addf %3, %2 : vector<3x8x256xf32>
    %5 = arith.divf %3, %4 : vector<3x8x256xf32>
    %6 = vector.extract_strided_slice %5 {offsets = [0, 0, 0], sizes = [3, 2, 256], strides = [1, 1, 1]} : vector<3x8x256xf32> to vector<3x2x256xf32>
    %c0_2 = arith.constant 0 : index
    %c0_3 = arith.constant 0 : index
    %7 = vector.load %arg3[%c0_2, %c0_3] : memref<2x256xf32, #tpu.memory_space<vmem>>, vector<2x256xf32>
    %8 = vector.shape_cast %7 : vector<2x256xf32> to vector<1x2x256xf32>
    %9 = vector.broadcast %8 : vector<1x2x256xf32> to vector<3x2x256xf32>
    %10 = arith.addf %6, %9 : vector<3x2x256xf32>
    %cst_4 = arith.constant 1.600000e+01 : f32
    %11 = vector.broadcast %cst_4 : f32 to vector<3x2x256xf32>
    %12 = arith.mulf %10, %11 : vector<3x2x256xf32>
    %13 = vector.extract_strided_slice %0 {offsets = [0, 2, 0], sizes = [3, 2, 256], strides = [1, 1, 1]} : vector<3x8x256xf32> to vector<3x2x256xf32>
    %14 = math.exp %13 : vector<3x2x256xf32>
    %c0_5 = arith.constant 0 : index
    %c0_6 = arith.constant 0 : index
    %c0_7 = arith.constant 0 : index
    %15 = vector.load %arg2[%c0_5, %c0_6, %c0_7] : memref<3x2x1xf32, #tpu.memory_space<vmem>>, vector<3x2x1xf32>
    %16 = vector.broadcast %15 : vector<3x2x1xf32> to vector<3x2x256xf32>
    %17 = arith.mulf %14, %16 : vector<3x2x256xf32>
    %c0_8 = arith.constant 0 : index
    %c0_9 = arith.constant 0 : index
    %c0_10 = arith.constant 0 : index
    %18 = vector.load %arg4[%c0_8, %c0_9, %c0_10] : memref<3x8x256xf32, #tpu.memory_space<vmem>>, vector<3x2x256xf32>
    tpu.vector_store %arg4[%c0_8, %c0_9, %c0_10], %12 {strides = array<i32>} : memref<3x8x256xf32, #tpu.memory_space<vmem>>, vector<3x2x256xf32>,
    %c0_11 = arith.constant 0 : index
    %c2 = arith.constant 2 : index
    %c0_12 = arith.constant 0 : index
    %19 = vector.load %arg4[%c0_11, %c2, %c0_12] : memref<3x8x256xf32, #tpu.memory_space<vmem>>, vector<3x2x256xf32>
    tpu.vector_store %arg4[%c0_11, %c2, %c0_12], %17 {strides = array<i32>} : memref<3x8x256xf32, #tpu.memory_space<vmem>>, vector<3x2x256xf32>,
    %20 = vector.extract_strided_slice %5 {offsets = [0, 4, 0], sizes = [3, 4, 256], strides = [1, 1, 1]} : vector<3x8x256xf32> to vector<3x4x256xf32>
    %c0_13 = arith.constant 0 : index
    %c4 = arith.constant 4 : index
    %c0_14 = arith.constant 0 : index
    %21 = vector.load %arg4[%c0_13, %c4, %c0_14] : memref<3x8x256xf32, #tpu.memory_space<vmem>>, vector<3x4x256xf32>
    tpu.vector_store %arg4[%c0_13, %c4, %c0_14], %20 {strides = array<i32>} : memref<3x8x256xf32, #tpu.memory_space<vmem>>, vector<3x4x256xf32>,
    return
  }
  func.func @transform_0(%arg0: i32) -> (i32, i32, i32) {
    %c0_i32 = arith.constant 0 : i32
    %c0_i32_0 = arith.constant 0 : i32
    %c0_i32_1 = arith.constant 0 : i32
    return %arg0, %c0_i32, %c0_i32_0 : i32, i32, i32
  }
  func.func @transform_1(%arg0: i32) -> (i32, i32, i32) {
    %c0_i32 = arith.constant 0 : i32
    %c0_i32_0 = arith.constant 0 : i32
    %c0_i32_1 = arith.constant 0 : i32
    return %arg0, %c0_i32, %c0_i32_0 : i32, i32, i32
  }
  func.func @transform_2(%arg0: i32) -> (i32, i32) {
    %c0_i32 = arith.constant 0 : i32
    %c0_i32_0 = arith.constant 0 : i32
    %c0_i32_1 = arith.constant 0 : i32
    return %c0_i32, %c0_i32_0 : i32, i32
  }
  func.func @transform_3(%arg0: i32) -> (i32, i32, i32) {
    %c0_i32 = arith.constant 0 : i32
    %c0_i32_0 = arith.constant 0 : i32
    %c0_i32_1 = arith.constant 0 : i32
    return %arg0, %c0_i32, %c0_i32_0 : i32, i32, i32
  }
}

</mosaic_0001>

<bundles_post_ra>
// kernel: tpu_custom_call.1
= control target key start
LH: loop header
LB: loop body
LE: loop exit
PB: predicated region body
PF: predicated region fallthrough
CT: control target
= control target key end

     0   :  { %8 = vsyncpa [#allocation3], 0  ;;  %s889_s0 = inlined_call_operand.hbm [shape: f32[6,8,256], index: 0, kind: input, shape index: {}]   ;;  %s890_s1 = inlined_call_operand.vmem [shape: f32[6,2,1], index: 1, kind: input, shape index: {}]   ;;  %s891_s2 = inlined_call_operand.vmem [shape: f32[2,256], index: 2, kind: input, shape index: {}]   ;;  %s892_s3 = inlined_call_operand.hbm [shape: f32[6,8,256], index: 3, kind: output, shape index: {}]  }
   0x1   :  { %10 = vsyncpa [#allocation3 + $0x1], 0 }
   0x2   :  { %11 = vsyncpa [#allocation4], 0 }
   0x3   :  { %13 = vsyncpa [#allocation4 + $0x1], 0  ;;  %s677_s12 = smov 0   ;;  %s679_s13 = smov 0  }
   0x4   :  { %s681_s14 = smov 0   ;;  %s683_s15 = smov 0  }
   0x5 LB: > { %s698_s16 = sadd.s32 4294967295, %s648_s15   ;;  %s437_s17 = sadd.s32 4294967294, %s648_s15   ;;  %s648_s15 = sphi %s683_s15, %s904_s15   ;;  %s644_s14 = sphi %s681_s14, %s903_s14   ;;  %s640_s13 = sphi %s679_s13, %s902_s13   ;;  %s636_s12 = sphi %s677_s12, %s901_s12  }
   0x6   : > { %s702_s18 = sadd.s32 1, %s648_s15   ;;  %s26_s19 = sadd.s32 1, %s644_s14 }
   0x7   : > { %s23_s20 = ssub.s32 %s648_s15, %s702_s18  ;;  %p33_p0 = scmp.ne.s32.totalorder %s644_s14, %s640_s13 }
   0x8   : > { %p24_p1 = scmp.eq.s32.totalorder %s23_s20, 0  ;;  %p34_p2 = scmp.eq.s32.totalorder %s648_s15, 0 }
   0x9   : > { %p39_p3 = scmp.ne.s32.totalorder %s640_s13, %s636_s12  ;;  %p40_p4 = scmp.eq.s32.totalorder %s698_s16, 0 }
   0xa   : > { %s714_s21 = scalar_select %p24_p1, %s644_s14, %s26_s19  }
   0xb   : > { %p35_p5 = por %p34_p2, %p33_p0  ;;  %p716_p6 = por %p40_p4, %p39_p3 }
   0xc   : > { %p110_p7 = scmp.eq.s32.totalorder %s698_s16, 1  ;;  %p116_p8 = scmp.eq.s32.totalorder %s437_s17, 1 }
   0xd   : > { %p475_p10 = scmp.lt.s32.totalorder %s648_s15, 2  ;;  %s139_s25 = sand.u32 1, %s644_s14  }
   0xe   : > { %p723_p11 = por %p110_p7, %p33_p0  ;;  %p727_p12 = por %p116_p8, %p39_p3 }
   0xf   : > { %s459_s26 = smul.u32 768, %s648_s15  ;;  %p738_p13 = pnand %p475_p10, %p35_p5 }
  0x10   : > { %s895_s23 = scalar_select %p723_p11, 1, 0 }
  0x11   : > { %s896_s24 = scalar_select %p727_p12, 1, 0 }
  0x12   : > { %s461_s27 = smul.u32 48, %s139_s25  ;;  %s736_s30 = scalar_lea.hbm %s889_s0, %s459_s26 }
  0x13   : > { %s744_s7 = scalar_lea.sflag [#allocation3], %s139_s25  ;;  %s552_s8 = scalar_lea.hbm %s736_s30, 768 }
  0x14   : > { %s143_s5 = scalar_lea.vmem [#allocation2], %s461_s27  ;;  %p553_p0 = scmp.ne.s32.totalorder %s736_s30, %s552_s8 }
  0x15   : > { %s151_s6 = sshll.u32 %s143_s5, 4  ;;  %p554_p1 = pneg %p738_p13  ;;  %s742_s6 = int_to_ptr.vmem [resolvable:$true] %s151_s6 }
  0x16   : > { %s557_s11 = scalar_lea.hbm %s889_s0, 1536  ;;  %p558_p4 = scmp.lt.u32.totalorder %s736_s30, %s889_s0 }
  0x17   : > { %p555_p2 = pnand %p554_p1, %p553_p0  ;;  %p559_p5 = scmp.lt.u32.totalorder %s557_s11, %s552_s8 }
  0x18   : > { %p561_p8 = scmp.lt.u32.totalorder %s552_s8, %s736_s30 }
  0x19   : > { %p556_p3 = pneg %p555_p2  ;;  %p560_p7 = por %p559_p5, %p558_p4 }
  0x1b   : > { %p562_p10 = por %p561_p8, %p560_p7 }
  0x1d   : > { %p563_p9 = pnand %p562_p10, %p556_p3 }
  0x1f   : > { %566 = shalt.err (!%p563_p9)
}
  0x20   : > { %s567_s20 = scalar_lea.vmem %s742_s6, 768  ;;  %s650_s25 = smov [#allocation2]  }
  0x21   : > { %p568_p0 = scmp.ne.s32.totalorder %s742_s6, %s567_s20  ;;  %s572_s26 = sshll.u32 %s650_s25, 4  ;;  %s573_s26 = int_to_ptr.vmem [resolvable:$false] %s572_s26 }
  0x22   : > { %s574_s27 = scalar_lea.vmem %s573_s26, 1536  ;;  %p575_p11 = scmp.lt.s32.totalorder %s742_s6, %s573_s26 }
  0x23   : > { %p570_p2 = pnand %p568_p0, %p554_p1  ;;  %p576_p4 = scmp.lt.s32.totalorder %s574_s27, %s567_s20 }
  0x25   : > { %p571_p12 = pneg %p570_p2  ;;  %p577_p5 = por %p576_p4, %p575_p11 }
  0x27   : > { %p578_p7 = pnand %p577_p5, %p571_p12 }
  0x29   : > { %581 = shalt.err (!%p578_p7)
}
  0x2a   : > { %s651_s28 = smov 256   ;;  %s652_s29 = smov 16  }
  0x2b   : > { %470 = dma.hbm_to_vmem [thread:$0]  (!%p738_p13), %s736_s30, 768, %s742_s6, %s744_s7, %s651_s28, %s651_s28, %s652_s29  }
  0x2c   : > { %p442_p9 = scmp.ge.s32.totalorder %s648_s15, 1  ;;  %p168_p1 = scmp.lt.s32.totalorder %s648_s15, 3 }
  0x2e   : > { %p169_p3 = pnand %p442_p9, %p168_p1 }
  0x2f   : > { %s775_s5 = sand.u32 (!%p169_p3), 1, %s640_s13  }
  0x30   : > { %172 = sbr.rel (%p169_p3) target bundleno = 215 (0xd7), region = 32  ;;  %s175_s9 = scalar_lea.sflag (!%p169_p3), [#allocation3], %s775_s5 }
  0x31   : > { %s462_s8 = smul.u32 (!%p169_p3), 48, %s775_s5 }
  0x33   : > { %s178_s10 = scalar_lea.vmem (!%p169_p3), [#allocation2], %s462_s8 }
  0x37   : > { %627 = dma.done.wait (%p716_p6), %s175_s9, 768  }
  0x38   : > { %629 = vsyncadd (%p716_p6), %s175_s9, 4294966528  ;;  %s207_s30 = smul.u32 3, %s698_s16  ;;  %v653_v0 = vmov 0   ;;  %v789_v1 = vld [vmem:[%s178_s10] sm:$0xff]  ;;  %v791_v2 = vld [vmem:[%s178_s10 + $0x8] sm:$0xff]  ;;  %s812_s19 = scalar_lea.vmem [#allocation5], %s462_s8 }
  0x39   : > { %514 = vset.pattern.permute.xlu0 %v653_v0  ;;  %515 = vset.pattern.permute.xlu1 %v653_v0  ;;  %v793_v5 = vld [vmem:[%s178_s10 + $0x20] sm:$0xff]  ;;  %v444_v6 = vmul.f32 -1.442695, %v789_v1  ;;  %v445_v7 = vmul.f32 -1.442695, %v791_v2  ;;  %v797_v9 = vld [vmem:[%s178_s10 + $0x28] sm:$0xff] }
  0x3a   : > { %p208_p11 = scmp.lt.s32.totalorder %s207_s30, 5  ;;  %v448_v10 = vmul.f32 -1.442695, %v793_v5  ;;  %v449_v11 = vmul.f32 -1.442695, %v797_v9  ;;  %v801_v12 = vld [vmem:[%s178_s10 + $0x10] sm:$0xff] }
  0x3b   : > { %516 = vpow2.f32 %v444_v6  ;;  %v803_v13 = vld [vmem:[%s178_s10 + $0x18] sm:$0xff]  ;;  %v446_v14 = vmul.f32 -1.442695, %v801_v12  ;;  %v280_v48 = vmul.f32 1.442695, %v789_v1  ;;  %s460_s20 = smul.u32 768, %s698_s16 }
  0x3c   : > { %s906_s30 = smov (!%p208_p11, %s207_s30), 5  ;;  %518 = vpow2.f32 %v445_v7  ;;  %v447_v15 = vmul.f32 -1.442695, %v803_v13  ;;  %v282_v49 = vmul.f32 1.442695, %v791_v2  ;;  %s352_s25 = sshll.u32 %s812_s19, 4  ;;  %s843_s25 = int_to_ptr.vmem [resolvable:$true] %s352_s25 }
  0x3d   : > { %s443_s4 = sshll.u32 %s906_s30, 1  ;;  %520 = vpow2.f32 %v448_v10  ;;  %v450_v25 = vld.sshfl [vmem:[%s891_s2] sm:$0x33 pattern:$0x76325410]  ;;  %s841_s16 = scalar_lea.hbm %s892_s3, %s460_s20 }
  0x3e   : > { %s211_s11 = scalar_lea.vmem %s890_s1, %s443_s4  ;;  %522 = vpow2.f32 %v449_v11  ;;  %v265_v29 = vcombine.high %v450_v25, %v450_v25  ;;  %v288_v50 = vmul.f32 1.442695, %v793_v5  ;;  %v290_v51 = vmul.f32 1.442695, %v797_v9  ;;  %s338_s28 = scalar_lea.sflag [#allocation4], %s775_s5 }
  0x3f   : > { %v292_v3 = vld [vmem:[%s211_s11] sm:$0x3]  ;;  %v294_v4 = vld [vmem:[%s211_s11 + $0x4] sm:$0x3]  ;;  %v293_v8 = vld [vmem:[%s211_s11 + $0x2] sm:$0x3]  ;;  %524 = vpow2.f32 %v446_v14 }
  0x40   : > { %297 = vperm.xlu0 %514, %v292_v3   ;;  %305 = vperm.xlu1 %515, %v294_v4   ;;  %526 = vpow2.f32 %v447_v15  ;;  %v284_v52 = vmul.f32 1.442695, %v801_v12  ;;  %v286_v53 = vmul.f32 1.442695, %v803_v13  ;;  %s582_s29 = scalar_lea.vmem %s843_s25, 768  ;;  %p898_p12 = scmp.ne.s32.totalorder %s895_s23, 0 }
  0x41   : > { %p583_p6 = scmp.ne.s32.totalorder %s843_s25, %s582_s29  ;;  %s654_s8 = smov [#allocation5]  }
  0x42   : > { %s586_s9 = sshll.u32 %s654_s8, 4  ;;  %s587_s9 = int_to_ptr.vmem [resolvable:$false] %s586_s9 }
  0x43   : > { %p584_p13 = pnand %p583_p6, %p898_p12  ;;  %s588_s10 = scalar_lea.vmem %s587_s9, 1536 }
  0x44   : > { %301 = vperm.xlu0 %514, %v293_v8   ;;  %p589_p10 = scmp.lt.s32.totalorder %s843_s25, %s587_s9  ;;  %p590_p0 = scmp.lt.s32.totalorder %s588_s10, %s582_s29 }
  0x45   : > { %v517_v16 = vpop.eup %516  ;;  %p585_p8 = pneg %p584_p13 }
  0x46   : > { %v519_v17 = vpop.eup %518  ;;  %v238_v18 = vadd.f32 1.0, %v517_v16  ;;  %p591_p2 = por %p590_p0, %p589_p10 }
  0x47   : > { %v239_v19 = vadd.f32 1.0, %v519_v17  ;;  %v521_v20 = vpop.eup %520 }
  0x48   : > { %528 = vrcp.f32 %v238_v18  ;;  %v523_v21 = vpop.eup %522  ;;  %v242_v22 = vadd.f32 1.0, %v521_v20  ;;  %p592_p4 = pnand %p591_p2, %p585_p8 }
  0x49   : > { %530 = vrcp.f32 %v239_v19  ;;  %v243_v23 = vadd.f32 1.0, %v523_v21  ;;  %v525_v24 = vpop.eup %524 }
  0x4a   : > { %532 = vrcp.f32 %v242_v22  ;;  %v527_v26 = vpop.eup %526  ;;  %v240_v27 = vadd.f32 1.0, %v525_v24 }
  0x4b   : > { %534 = vrcp.f32 %v243_v23  ;;  %v241_v28 = vadd.f32 1.0, %v527_v26 }
  0x4c   : > { %536 = vrcp.f32 %v240_v27 }
  0x4d   : > { %538 = vrcp.f32 %v241_v28 }
  0x4e   : > { %540 = vpow2.f32 %v280_v48 }
  0x4f   : > { %542 = vpow2.f32 %v282_v49 }
  0x50   : > { %544 = vpow2.f32 %v288_v50 }
  0x51   : > { %546 = vpow2.f32 %v290_v51 }
  0x52   : > { %v529_v30 = vpop.eup %528  ;;  %548 = vpow2.f32 %v284_v52 }
  0x53   : > { %v531_v31 = vpop.eup %530  ;;  %v268_v32 = vadd.f32 %v529_v30, %v450_v25  ;;  %331 = vst [vmem:[%s812_s19] sm:$0xf0] %v529_v30  ;;  %550 = vpow2.f32 %v286_v53 }
  0x54   : > { %v269_v33 = vadd.f32 %v531_v31, %v265_v29  ;;  %332 = vst [vmem:[%s812_s19 + $0x8] sm:$0xf0] %v531_v31  ;;  %v533_v35 = vpop.eup %532 }
  0x55   : > { %v274_v34 = vmul.f32 16.0, %v268_v32  ;;  %v535_v37 = vpop.eup %534  ;;  %v272_v38 = vadd.f32 %v533_v35, %v450_v25  ;;  %335 = vst [vmem:[%s812_s19 + $0x20] sm:$0xf0] %v533_v35 }
  0x56   : > { %v275_v36 = vmul.f32 16.0, %v269_v33  ;;  %v273_v39 = vadd.f32 %v535_v37, %v265_v29  ;;  %336 = vst [vmem:[%s812_s19 + $0x28] sm:$0xf0] %v535_v37  ;;  %v537_v41 = vpop.eup %536 }
  0x57   : > { %319 = vst [vmem:[%s812_s19] sm:$0x3] %v274_v34  ;;  %v278_v40 = vmul.f32 16.0, %v272_v38  ;;  %v539_v43 = vpop.eup %538  ;;  %v270_v44 = vadd.f32 %v537_v41, %v450_v25  ;;  %333 = vst [vmem:[%s812_s19 + $0x10] sm:$0xf0] %v537_v41 }
  0x58   : > { %320 = vst [vmem:[%s812_s19 + $0x8] sm:$0x3] %v275_v36  ;;  %v279_v42 = vmul.f32 16.0, %v273_v39  ;;  %v271_v45 = vadd.f32 %v539_v43, %v265_v29  ;;  %334 = vst [vmem:[%s812_s19 + $0x18] sm:$0xf0] %v539_v43  ;;  %v541_v54 = vpop.eup %540 }
  0x59   : > { %323 = vst [vmem:[%s812_s19 + $0x20] sm:$0x3] %v278_v40  ;;  %v276_v46 = vmul.f32 16.0, %v270_v44  ;;  %v543_v55 = vpop.eup %542 }
  0x5a   : > { %324 = vst [vmem:[%s812_s19 + $0x28] sm:$0x3] %v279_v42  ;;  %v277_v47 = vmul.f32 16.0, %v271_v45  ;;  %v545_v56 = vpop.eup %544 }
  0x5b   : > { %321 = vst [vmem:[%s812_s19 + $0x10] sm:$0x3] %v276_v46  ;;  %v547_v57 = vpop.eup %546 }
  0x5c   : > { %322 = vst [vmem:[%s812_s19 + $0x18] sm:$0x3] %v277_v47  ;;  %v549_v62 = vpop.eup %548 }
  0x5d   : > { %v551_v3 = vpop.eup %550 }
  0xbf   : > { %v298_v58 = vpop.permute.xlu0 %297  ;;  %v306_v59 = vpop.permute.xlu1 %305 }
  0xc0   : > { %v307_v60 = vrot.slane %v298_v58, 6  ;;  %v309_v61 = vrot.slane %v306_v59, 6 }
  0xc2   : > { %v313_v63 = vmul.f32 %v541_v54, %v307_v60  ;;  %v314_v0 = vmul.f32 %v543_v55, %v307_v60  ;;  %v317_v1 = vmul.f32 %v545_v56, %v309_v61  ;;  %v318_v2 = vmul.f32 %v547_v57, %v309_v61 }
  0xc3   : > { %v302_v4 = vpop.permute.xlu0 %301 }
  0xc4   : > { %325 = vst [vmem:[%s812_s19] sm:$0xc] %v313_v63  ;;  %326 = vst [vmem:[%s812_s19 + $0x8] sm:$0xc] %v314_v0  ;;  %v308_v5 = vrot.slane %v302_v4, 6 }
  0xc5   : > { %329 = vst [vmem:[%s812_s19 + $0x20] sm:$0xc] %v317_v1  ;;  %330 = vst [vmem:[%s812_s19 + $0x28] sm:$0xc] %v318_v2 }
  0xc6   : > { %v315_v6 = vmul.f32 %v549_v62, %v308_v5  ;;  %v316_v7 = vmul.f32 %v551_v3, %v308_v5 }
  0xc8   : > { %327 = vst [vmem:[%s812_s19 + $0x10] sm:$0xc] %v315_v6  ;;  %328 = vst [vmem:[%s812_s19 + $0x18] sm:$0xc] %v316_v7 }
  0xc9   : > { %595 = shalt.err (!%p592_p4)
}
  0xca   : > { %s596_s30 = scalar_lea.hbm %s841_s16, 768  ;;  %s600_s7 = scalar_lea.hbm %s892_s3, 1536 }
  0xcb   : > { %p597_p5 = scmp.ne.s32.totalorder %s841_s16, %s596_s30  ;;  %p601_p1 = scmp.lt.u32.totalorder %s841_s16, %s892_s3 }
  0xcc   : > { %p602_p3 = scmp.lt.u32.totalorder %s600_s7, %s596_s30  ;;  %p604_p6 = scmp.lt.u32.totalorder %s596_s30, %s841_s16 }
  0xcd   : > { %p598_p7 = pnand %p597_p5, %p898_p12 }
  0xce   : > { %p603_p11 = por %p602_p3, %p601_p1 }
  0xcf   : > { %p599_p9 = pneg %p598_p7 }
  0xd0   : > { %p605_p13 = por %p604_p6, %p603_p11 }
  0xd2   : > { %p606_p8 = pnand %p605_p13, %p599_p9 }
  0xd4   : > { %609 = shalt.err (!%p606_p8)
}
  0xd5   : > { %s655_s17 = smov 256   ;;  %s656_s19 = smov 16  }
  0xd6   : > { %465 = dma.vmem_to_hbm [thread:$0]  (%p898_p12), %s843_s25, 768, %s841_s16, %s338_s28, %s655_s17, %s655_s17, %s656_s19  }
  0xd7 PF: > { %s367_s20 = sand.u32 1, %s636_s12   ;;  %p899_p10 = scmp.ne.s32.totalorder %s896_s24, 0 }
  0xd8   : > { %p900_p0 = scmp.ge.s32.totalorder %s648_s15, 2  ;;  %s368_s26 = scalar_lea.sflag [#allocation4], %s367_s20 }
  0xda   : > { %p472_p2 = pnand %p900_p0, %p899_p10 }
  0xdc   : > { %631 = dma.done.wait (!%p472_p2), %s368_s26, 768  }
  0xdd   : > { %633 = vsyncadd (!%p472_p2), %s368_s26, 4294966528  ;;  %p16_p4 = scmp.ge.s32.totalorder %s702_s18, 4   ;;  %s901_s12 = smov %s640_s13 }
  0xde   : > { %s902_s13 = smov %s644_s14  ;;  %s903_s14 = smov %s714_s21 }
  0xdf   : > { %s904_s15 = smov %s702_s18  ;;  %18 = sbr.rel (!%p16_p4) target bundleno = 5 (0x5), region = 80 }
  0xe6   :  { %373 = vsyncpa [#allocation3], 1 }
  0xe7   :  { %375 = vsyncpa [#allocation3 + $0x1], 1 }
  0xe8   :  { %376 = vsyncpa [#allocation4], 1 }
  0xe9   :  { %378 = vsyncpa [#allocation4 + $0x1], 1 }

</bundles_post_ra>
